<compile_context>
chip_gen: v6e
topology: v6e:2x2x1
jax: 0.10.0
libtpu: 0.0.40
codegen_flags: <defaults>
</compile_context>

<pallas_src>
import math

import jax
import jax.numpy as jnp
from jax import lax
from jax.experimental import pallas as pl
from jax.experimental.pallas import tpu as pltpu

EMB_SIZE = 128
HEAD_SIZE = 8
SEQ_LEN = 64
NEG_BIG = -1e30  # large finite negative for causal masking


def masked_attention_kernel(x_ref, wq_ref, wk_ref, wv_ref, o_ref):
    bt, T, E = x_ref.shape
    hs = wq_ref.shape[1]

    # Flatten the batch block: (bt, T, E) -> (bt*T, E). bf16 MXU operands,
    # f32 accumulation.
    xf = x_ref[...].reshape(bt * T, E).astype(jnp.bfloat16)

    q = jnp.dot(xf, wq_ref[...], preferred_element_type=jnp.float32)
    k = jnp.dot(xf, wk_ref[...], preferred_element_type=jnp.float32)
    v = jnp.dot(xf, wv_ref[...], preferred_element_type=jnp.float32)
    q = q.reshape(bt, T, hs)
    k = k.reshape(bt, T, hs)
    v = v.reshape(bt, T, hs)

    # scores = q @ k^T / C**0.5  (reference divides by emb_size**0.5, not hs**0.5)
    inv_scale = jnp.float32(1.0 / math.sqrt(E))
    s = jnp.einsum("bqh,bkh->bqk",
                   q.astype(jnp.bfloat16), k.astype(jnp.bfloat16),
                   preferred_element_type=jnp.float32) * inv_scale

    # Causal mask with a large finite negative (avoids inf/NaN special cases).
    row = lax.broadcasted_iota(jnp.int32, s.shape, 1)
    col = lax.broadcasted_iota(jnp.int32, s.shape, 2)
    s = jnp.where(row >= col, s, jnp.float32(NEG_BIG))

    # Softmax in f32, batched over every row of the block at once.
    s = s - jnp.max(s, axis=-1, keepdims=True)
    e = jnp.exp(s)
    p = e * pl.reciprocal(jnp.sum(e, axis=-1, keepdims=True), approx=True)
    # TODO(synk): nn.Dropout(0.4) on the attention weights is treated as
    # identity (eval-mode semantics); no in-kernel RNG dropout.

    out = jnp.einsum("bqk,bkh->bqh",
                     p.astype(jnp.bfloat16), v.astype(jnp.bfloat16),
                     preferred_element_type=jnp.float32)
    o_ref[...] = out.astype(o_ref.dtype)


@jax.jit
def masked_attention(x, wq, wk, wv):
    """x: (B, T, E) f32; wq/wk/wv: (E, hs)  (transposed vs. nn.Linear.weight)."""
    B, T, E = x.shape
    hs = wq.shape[1]

    # >= 2 grid steps when possible (v7x has 2 TCs) and block_b*T rows per
    # step so the projection matmuls fill the MXU (128 rows for B=4, T=64).
    block_b = B // 2 if (B % 2 == 0 and B >= 2) else 1
    grid = (B // block_b,)

    # bf16 weights at the boundary: halves weight DMA/VMEM, MXU-native dtype.
    wq = wq.astype(jnp.bfloat16)
    wk = wk.astype(jnp.bfloat16)
    wv = wv.astype(jnp.bfloat16)

    cost = pl.CostEstimate(
        flops=2 * B * T * hs * (3 * E + 2 * T),
        transcendentals=B * T * T,
        bytes_accessed=x.size * 4 + 3 * E * hs * 2 + B * T * hs * 4,
    )

    weight_spec = pl.BlockSpec((E, hs), lambda b: (0, 0))
    return pl.pallas_call(
        masked_attention_kernel,
        out_shape=jax.ShapeDtypeStruct((B, T, hs), x.dtype),
        grid=grid,
        in_specs=[
            pl.BlockSpec((block_b, T, E), lambda b: (b, 0, 0)),   # x
            weight_spec, weight_spec, weight_spec,                # wq, wk, wv
        ],
        out_specs=pl.BlockSpec((block_b, T, hs), lambda b: (b, 0, 0)),
        compiler_params=pltpu.CompilerParams(
            dimension_semantics=("parallel",),
            vmem_limit_bytes=16 << 20,   # footprint is tiny; don't ask for all of v7x VMEM
        ),
        cost_estimate=cost,
    )(x, wq, wk, wv)


def masked_attention_ref(x, wq, wk, wv):
    """Pure-JAX f32 reference matching the PyTorch forward (eval-mode dropout)."""
    B, T, C = x.shape
    q = x @ wq
    k = x @ wk
    v = x @ wv
    s = jnp.einsum("bqh,bkh->bqk", q, k) / (C ** 0.5)
    mask = jnp.tril(jnp.ones((T, T), dtype=bool))
    s = jnp.where(mask[None], s, -jnp.inf)
    return jax.nn.softmax(s, axis=-1) @ v


if __name__ == "__main__":
    key = jax.random.PRNGKey(0)
    kx, kq, kk, kv = jax.random.split(key, 4)
    B, T, E, HS = 4, SEQ_LEN, EMB_SIZE, HEAD_SIZE

    x = jax.random.normal(kx, (B, T, E), jnp.float32)
    wscale = 1.0 / math.sqrt(E)
    wq = wscale * jax.random.normal(kq, (E, HS), jnp.float32)
    wk = wscale * jax.random.normal(kk, (E, HS), jnp.float32)
    wv = wscale * jax.random.normal(kv, (E, HS), jnp.float32)

    out = masked_attention(x, wq, wk, wv)
    jax.block_until_ready(out)
    assert out.shape == (B, T, HS) and out.dtype == jnp.float32

    ref = masked_attention_ref(x, wq, wk, wv)
    err = float(jnp.max(jnp.abs(out - ref)))
    assert err < 3e-2, f"max abs error vs f32 reference: {err}"
    print("KERNEL_OK")
</pallas_src>

<mosaic_0001>
module attributes {stable_mosaic.version = 11 : i64} {
  func.func @masked_attention_kernel(%arg0: i32, %arg1: memref<2x64x128xf32, #tpu.memory_space<vmem>>, %arg2: memref<128x8xbf16, #tpu.memory_space<vmem>>, %arg3: memref<128x8xbf16, #tpu.memory_space<vmem>>, %arg4: memref<128x8xbf16, #tpu.memory_space<vmem>>, %arg5: memref<2x64x8xf32, #tpu.memory_space<vmem>>) attributes {dimension_semantics = [#tpu.dimension_semantics<parallel>], iteration_bounds = array<i64: 2>, scalar_prefetch = 0 : i64, scratch_operands = 0 : i64, tpu.core_type = #tpu.core_type<tc>, window_params = [{transform_indices = @transform_0, window_bounds = array<i64: 2, 64, 128>}, {pipeline_mode = #tpu.pipeline_mode<synchronous>, transform_indices = @transform_1, window_bounds = array<i64: 128, 8>}, {pipeline_mode = #tpu.pipeline_mode<synchronous>, transform_indices = @transform_2, window_bounds = array<i64: 128, 8>}, {pipeline_mode = #tpu.pipeline_mode<synchronous>, transform_indices = @transform_3, window_bounds = array<i64: 128, 8>}, {transform_indices = @transform_4, window_bounds = array<i64: 2, 64, 8>}]} {
    %c0 = arith.constant 0 : index
    %c0_0 = arith.constant 0 : index
    %c0_1 = arith.constant 0 : index
    %0 = vector.load %arg1[%c0, %c0_0, %c0_1] : memref<2x64x128xf32, #tpu.memory_space<vmem>>, vector<2x64x128xf32>
    %1 = vector.shape_cast %0 : vector<2x64x128xf32> to vector<128x128xf32>
    %2 = arith.truncf %1 : vector<128x128xf32> to vector<128x128xbf16>
    %c0_2 = arith.constant 0 : index
    %c0_3 = arith.constant 0 : index
    %3 = vector.load %arg2[%c0_2, %c0_3] : memref<128x8xbf16, #tpu.memory_space<vmem>>, vector<128x8xbf16>
    %cst = arith.constant dense<0.000000e+00> : vector<128x8xf32>
    %4 = tpu.matmul %2, %3, %cst {dimension_numbers = #tpu.dot_dimension_numbers<[1], [0], [0], [1], [0, 0, 1, 1], [], []>} : vector<128x128xbf16>, vector<128x8xbf16>, vector<128x8xf32> -> vector<128x8xf32>
    %c0_4 = arith.constant 0 : index
    %c0_5 = arith.constant 0 : index
    %5 = vector.load %arg3[%c0_4, %c0_5] : memref<128x8xbf16, #tpu.memory_space<vmem>>, vector<128x8xbf16>
    %cst_6 = arith.constant dense<0.000000e+00> : vector<128x8xf32>
    %6 = tpu.matmul %2, %5, %cst_6 {dimension_numbers = #tpu.dot_dimension_numbers<[1], [0], [0], [1], [0, 0, 1, 1], [], []>} : vector<128x128xbf16>, vector<128x8xbf16>, vector<128x8xf32> -> vector<128x8xf32>
    %c0_7 = arith.constant 0 : index
    %c0_8 = arith.constant 0 : index
    %7 = vector.load %arg4[%c0_7, %c0_8] : memref<128x8xbf16, #tpu.memory_space<vmem>>, vector<128x8xbf16>
    %cst_9 = arith.constant dense<0.000000e+00> : vector<128x8xf32>
    %8 = tpu.matmul %2, %7, %cst_9 {dimension_numbers = #tpu.dot_dimension_numbers<[1], [0], [0], [1], [0, 0, 1, 1], [], []>} : vector<128x128xbf16>, vector<128x8xbf16>, vector<128x8xf32> -> vector<128x8xf32>
    %9 = vector.shape_cast %4 : vector<128x8xf32> to vector<2x64x8xf32>
    %10 = vector.shape_cast %6 : vector<128x8xf32> to vector<2x64x8xf32>
    %11 = vector.shape_cast %8 : vector<128x8xf32> to vector<2x64x8xf32>
    %12 = arith.truncf %9 : vector<2x64x8xf32> to vector<2x64x8xbf16>
    %13 = arith.truncf %10 : vector<2x64x8xf32> to vector<2x64x8xbf16>
    "tpu.trace_start"() <{level = 10 : i32, message = "bqh,bkh->bqk"}> : () -> ()
    %cst_10 = arith.constant dense<0.000000e+00> : vector<2x64x64xf32>
    %14 = tpu.matmul %12, %13, %cst_10 {dimension_numbers = #tpu.dot_dimension_numbers<[2], [2], [1], [1], [0, 0, 0, 1, 1, 1], [0], [0]>} : vector<2x64x8xbf16>, vector<2x64x8xbf16>, vector<2x64x64xf32> -> vector<2x64x64xf32>
    "tpu.trace_stop"() : () -> ()
    %cst_11 = arith.constant 0.0883883461 : f32
    %15 = vector.broadcast %cst_11 : f32 to vector<2x64x64xf32>
    %16 = arith.mulf %14, %15 : vector<2x64x64xf32>
    %17 = tpu.iota {dimensions = array<i32: 1>} : vector<2x64x64xi32>
    %18 = tpu.iota {dimensions = array<i32: 2>} : vector<2x64x64xi32>
    %19 = arith.cmpi sge, %17, %18 : vector<2x64x64xi32>
    %cst_12 = arith.constant -1.000000e+30 : f32
    %20 = vector.broadcast %cst_12 : f32 to vector<2x64x64xf32>
    %21 = arith.select %19, %16, %20 : vector<2x64x64xi1>, vector<2x64x64xf32>
    %cst_13 = arith.constant dense<0xFF800000> : vector<2x64xf32>
    %22 = vector.multi_reduction <maximumf>, %21, %cst_13 [2] : vector<2x64x64xf32> to vector<2x64xf32>
    %23 = vector.shape_cast %22 : vector<2x64xf32> to vector<2x64x1xf32>
    %24 = vector.broadcast %23 : vector<2x64x1xf32> to vector<2x64x64xf32>
    %25 = arith.subf %21, %24 : vector<2x64x64xf32>
    %26 = math.exp %25 : vector<2x64x64xf32>
    %cst_14 = arith.constant dense<0.000000e+00> : vector<2x64xf32>
    %27 = vector.multi_reduction <add>, %26, %cst_14 [2] : vector<2x64x64xf32> to vector<2x64xf32>
    %28 = vector.shape_cast %27 : vector<2x64xf32> to vector<2x64x1xf32>
    %29 = tpu.reciprocal %28 {approx = true} : vector<2x64x1xf32> -> vector<2x64x1xf32>
    %30 = vector.broadcast %29 : vector<2x64x1xf32> to vector<2x64x64xf32>
    %31 = arith.mulf %26, %30 : vector<2x64x64xf32>
    %32 = arith.truncf %31 : vector<2x64x64xf32> to vector<2x64x64xbf16>
    %33 = arith.truncf %11 : vector<2x64x8xf32> to vector<2x64x8xbf16>
    "tpu.trace_start"() <{level = 10 : i32, message = "bqk,bkh->bqh"}> : () -> ()
    %cst_15 = arith.constant dense<0.000000e+00> : vector<2x64x8xf32>
    %34 = tpu.matmul %32, %33, %cst_15 {dimension_numbers = #tpu.dot_dimension_numbers<[2], [1], [1], [2], [0, 0, 0, 1, 1, 2], [0], [0]>} : vector<2x64x64xbf16>, vector<2x64x8xbf16>, vector<2x64x8xf32> -> vector<2x64x8xf32>
    "tpu.trace_stop"() : () -> ()
    %c0_16 = arith.constant 0 : index
    %c0_17 = arith.constant 0 : index
    %c0_18 = arith.constant 0 : index
    %35 = vector.load %arg5[%c0_16, %c0_17, %c0_18] : memref<2x64x8xf32, #tpu.memory_space<vmem>>, vector<2x64x8xf32>
    tpu.vector_store %arg5[%c0_16, %c0_17, %c0_18], %34 {strides = array<i32>} : memref<2x64x8xf32, #tpu.memory_space<vmem>>, vector<2x64x8xf32>,
    return
  }
  func.func @transform_0(%arg0: i32) -> (i32, i32, i32) {
    %c0_i32 = arith.constant 0 : i32
    %c0_i32_0 = arith.constant 0 : i32
    %c0_i32_1 = arith.constant 0 : i32
    return %arg0, %c0_i32, %c0_i32_0 : i32, i32, i32
  }
  func.func @transform_1(%arg0: i32) -> (i32, i32) {
    %c0_i32 = arith.constant 0 : i32
    %c0_i32_0 = arith.constant 0 : i32
    %c0_i32_1 = arith.constant 0 : i32
    return %c0_i32, %c0_i32_0 : i32, i32
  }
  func.func @transform_2(%arg0: i32) -> (i32, i32) {
    %c0_i32 = arith.constant 0 : i32
    %c0_i32_0 = arith.constant 0 : i32
    %c0_i32_1 = arith.constant 0 : i32
    return %c0_i32, %c0_i32_0 : i32, i32
  }
  func.func @transform_3(%arg0: i32) -> (i32, i32) {
    %c0_i32 = arith.constant 0 : i32
    %c0_i32_0 = arith.constant 0 : i32
    %c0_i32_1 = arith.constant 0 : i32
    return %c0_i32, %c0_i32_0 : i32, i32
  }
  func.func @transform_4(%arg0: i32) -> (i32, i32, i32) {
    %c0_i32 = arith.constant 0 : i32
    %c0_i32_0 = arith.constant 0 : i32
    %c0_i32_1 = arith.constant 0 : i32
    return %arg0, %c0_i32, %c0_i32_0 : i32, i32, i32
  }
}

</mosaic_0001>

<bundles_post_ra>
// kernel: masked_attention.1
= control target key start
LH: loop header
LB: loop body
LE: loop exit
PB: predicated region body
PF: predicated region fallthrough
CT: control target
= control target key end

     0   :  { %9 = vsyncpa [#allocation3], 0  ;;  %s2454_s0 = inlined_call_operand.hbm [shape: f32[4,64,128], index: 0, kind: input, shape index: {}]   ;;  %s2455_s1 = inlined_call_operand.vmem [shape: bf16[128,8], index: 1, kind: input, shape index: {}]   ;;  %s2456_s2 = inlined_call_operand.vmem [shape: bf16[128,8], index: 2, kind: input, shape index: {}]   ;;  %s2457_s3 = inlined_call_operand.vmem [shape: bf16[128,8], index: 3, kind: input, shape index: {}]   ;;  %s2458_s4 = inlined_call_operand.vmem [shape: f32[4,64,8], index: 4, kind: output, shape index: {}]  }
   0x1   :  { %11 = vsyncpa [#allocation3 + $0x1], 0  ;;  %s1936_s15 = smov 0   ;;  %s1938_s16 = smov 0  }
   0x2   :  { %s1940_s17 = smov 0   ;;  %s1942_s18 = smov 0  }
   0x3 LB: > { %s1409_s19 = sadd.s32 4294967295, %s1906_s18   ;;  %s1956_s20 = sadd.s32 1, %s1906_s18   ;;  %s1906_s18 = sphi %s1942_s18, %s2467_s18   ;;  %s1902_s17 = sphi %s1940_s17, %s2466_s17   ;;  %s1898_s16 = sphi %s1938_s16, %s2465_s16   ;;  %s1894_s15 = sphi %s1936_s15, %s2464_s15  }
   0x4   : > { %s21_s21 = ssub.s32 %s1906_s18, %s1956_s20  ;;  %s24_s22 = sadd.s32 1, %s1902_s17 }
   0x5   : > { %p22_p0 = scmp.eq.s32.totalorder %s21_s21, 0  ;;  %p31_p1 = scmp.ne.s32.totalorder %s1902_s17, %s1898_s16 }
   0x6   : > { %p32_p2 = scmp.eq.s32.totalorder %s1906_s18, 0  ;;  %p37_p3 = scmp.ne.s32.totalorder %s1898_s16, %s1894_s15 }
   0x7   : > { %s1966_s23 = scalar_select %p22_p0, %s1902_s17, %s24_s22  }
   0x8   : > { %p33_p4 = por %p32_p2, %p31_p1  ;;  %p38_p5 = scmp.eq.s32.totalorder %s1409_s19, 0 }
   0x9   : > { %p1721_p6 = scmp.lt.s32.totalorder %s1906_s18, 2  ;;  %s159_s25 = sand.u32 1, %s1902_s17  }
   0xa   : > { %p1971_p7 = por %p38_p5, %p37_p3  ;;  %s1413_s26 = sshll.u32 %s159_s25, 7 }
   0xb   : > { %s1465_s27 = sshll.u32 %s1906_s18, 11  ;;  %s163_s5 = scalar_lea.vmem [#allocation2], %s1413_s26 }
   0xc   : > { %s2460_s24 = scalar_select %p1971_p7, 1, 0 }
   0xd   : > { %s1980_s30 = scalar_lea.hbm %s2454_s0, %s1465_s27  ;;  %s171_s6 = sshll.u32 %s163_s5, 4  ;;  %s1982_s6 = int_to_ptr.vmem [resolvable:$true] %s171_s6 }
   0xe   : > { %p1984_p8 = pnand %p1721_p6, %p33_p4  ;;  %s1989_s8 = scalar_lea.sflag [#allocation3], %s159_s25 }
   0xf   : > { %s1844_s9 = scalar_lea.hbm %s1980_s30, 2048  ;;  %s1849_s12 = scalar_lea.hbm %s2454_s0, 4096 }
  0x10   : > { %p1845_p10 = scmp.ne.s32.totalorder %s1980_s30, %s1844_s9  ;;  %p1846_p11 = pneg %p1984_p8 }
  0x11   : > { %p1850_p0 = scmp.lt.s32.totalorder %s1980_s30, %s2454_s0  ;;  %p1851_p1 = scmp.lt.s32.totalorder %s1849_s12, %s1844_s9 }
  0x12   : > { %p1847_p12 = pnand %p1846_p11, %p1845_p10 }
  0x13   : > { %p1852_p2 = por %p1851_p1, %p1850_p0 }
  0x14   : > { %p1848_p13 = pneg %p1847_p12 }
  0x16   : > { %p1853_p3 = pnand %p1852_p2, %p1848_p13 }
  0x18   : > { %1856 = shalt.err (!%p1853_p3)
}
  0x19   : > { %s1857_s15 = scalar_lea.vmem %s1982_s6, 2048  ;;  %s1908_s21 = smov [#allocation2]  }
  0x1a   : > { %p1858_p4 = scmp.ne.s32.totalorder %s1982_s6, %s1857_s15  ;;  %s1862_s22 = sshll.u32 %s1908_s21, 4  ;;  %s1863_s22 = int_to_ptr.vmem [resolvable:$false] %s1862_s22 }
  0x1b   : > { %s1864_s25 = scalar_lea.vmem %s1863_s22, 4096  ;;  %p1865_p10 = scmp.lt.s32.totalorder %s1982_s6, %s1863_s22 }
  0x1c   : > { %p1860_p5 = pnand %p1858_p4, %p1846_p11  ;;  %p1866_p12 = scmp.lt.s32.totalorder %s1864_s25, %s1857_s15 }
  0x1e   : > { %p1861_p6 = pneg %p1860_p5  ;;  %p1867_p9 = por %p1866_p12, %p1865_p10 }
  0x20   : > { %p1868_p7 = pnand %p1867_p9, %p1861_p6 }
  0x22   : > { %1871 = shalt.err (!%p1868_p7)
}
  0x23   : > { %s1909_s26 = smov 128   ;;  %s1910_s27 = smov 8  }
  0x24   : > { %1720 = dma.hbm_to_vmem [thread:$0]  (!%p1984_p8), %s1980_s30, 2048, %s1982_s6, %s1989_s8, %s1909_s26, %s1909_s26, %s1910_s27  }
  0x25   : > { %p179_p11 = scmp.lt.s32.totalorder %s1906_s18, 3  ;;  %p2462_p13 = scmp.ge.s32.totalorder %s1906_s18, 1 }
  0x27   : > { %p180_p0 = pnand %p2462_p13, %p179_p11 }
  0x28   : > { %s185_s28 = sand.u32 (!%p180_p0), 1, %s1898_s16   ;;  %p2463_p7 = scmp.ne.s32.totalorder (!%p180_p0), %s2460_s24, 0 }
  0x29   : > { %183 = sbr.rel (%p180_p0) target bundleno = 1064 (0x428), region = 36  ;;  %s1418_s29 = sshll.u32 (!%p180_p0), %s185_s28, 7 }
  0x2a   : > { %s186_s5 = scalar_lea.sflag (!%p180_p0), [#allocation3], %s185_s28  ;;  %s2014_s9 = scalar_lea.vmem (!%p180_p0), [#allocation2], %s1418_s29 }
  0x2e   : > { %1889 = dma.done.wait (%p2463_p7), %s186_s5, 2048  }
  0x2f   : > { %1891 = vsyncadd (%p2463_p7), %s186_s5, 4294965248  ;;  %v1756_v0 = vld [vmem:[%s2456_s2 + $0x38] sm:$0xff]   ;;  %v1757_v1 = vld [vmem:[%s2456_s2 + $0x30] sm:$0xff]   ;;  %vm747_vm0 = vcmask 64512   ;;  %vm977_vm2 = vcmask 523264   ;;  %s1419_s14 = sshll.u32 %s1409_s19, 1 }
  0x30   : > { %1579 = vmatprep.subr.bf16.mxu1 %v1756_v0  ;;  %v1758_v2 = vld [vmem:[%s2456_s2 + $0x28] sm:$0xff]   ;;  %v1759_v3 = vld [vmem:[%s2456_s2 + $0x20] sm:$0xff]   ;;  %v1764_v7 = vld [vmem:[%s2455_s1 + $0x38] sm:$0xff]   ;;  %p217_p8 = scmp.lt.s32.totalorder %s1419_s14, 3 }
  0x31   : > { %1580 = vmatpush3.bf16.msra.mxu1 %v1756_v0  ;;  %v224_v4 = vld [vmem:[%s2014_s9] sm:$0xff]  ;;  %v225_v5 = vld [vmem:[%s2014_s9 + $0x8] sm:$0xff]  ;;  %v1765_v8 = vld [vmem:[%s2455_s1 + $0x30] sm:$0xff]   ;;  %1547 = vmatprep.subr.bf16.mxu0 %v1764_v7 }
  0x32   : > { %1581 = vmatprep.subr.bf16.mxu1 %v1757_v1  ;;  %v2034_v6 = vpack.c.bf16 %v225_v5, %v224_v4  ;;  %v1760_v9 = vld [vmem:[%s2456_s2 + $0x18] sm:$0xff]   ;;  %1548 = vmatpush3.bf16.msra.mxu0 %v1764_v7  ;;  %v1766_v10 = vld [vmem:[%s2455_s1 + $0x28] sm:$0xff]   ;;  %v1761_v11 = vld [vmem:[%s2456_s2 + $0x10] sm:$0xff]   ;;  %s2469_s14 = smov (!%p217_p8, %s1419_s14), 3 }
  0x33   : > { %1549 = vmatprep.subr.bf16.mxu0 %v1765_v8  ;;  %v1767_v12 = vld [vmem:[%s2455_s1 + $0x20] sm:$0xff]   ;;  %v1762_v13 = vld [vmem:[%s2456_s2 + $0x8] sm:$0xff]   ;;  %v1768_v14 = vld [vmem:[%s2455_s1 + $0x18] sm:$0xff]   ;;  %s1466_s15 = sshll.u32 %s2469_s14, 6 }
  0x34   : > { %1595 = vmatprep.mubr.bf16.mxu1 %v2034_v6  ;;  %1563 = vmatprep.mubr.bf16.mxu0 %v2034_v6  ;;  %v1763_v15 = vld [vmem:[%s2456_s2] sm:$0xff]   ;;  %v226_v16 = vld [vmem:[%s2014_s9 + $0x10] sm:$0xff]  ;;  %v227_v17 = vld [vmem:[%s2014_s9 + $0x18] sm:$0xff]  ;;  %s2407_s25 = scalar_lea.vmem %s2458_s4, %s1466_s15 }
  0x35   : > { %1582 = vmatpush3.bf16.msra.mxu1 %v1757_v1  ;;  %v1769_v18 = vld [vmem:[%s2455_s1 + $0x10] sm:$0xff]   ;;  %v228_v19 = vld [vmem:[%s2014_s9 + $0x20] sm:$0xff]  ;;  %v229_v20 = vld [vmem:[%s2014_s9 + $0x28] sm:$0xff]  ;;  %v2072_v21 = vpack.c.bf16 %v227_v17, %v226_v16 }
  0x36   : > { %1583 = vmatprep.subr.bf16.mxu1 %v1758_v2  ;;  %1550 = vmatpush3.bf16.msra.mxu0 %v1765_v8  ;;  %v1770_v22 = vld [vmem:[%s2455_s1 + $0x8] sm:$0xff]   ;;  %v242_v23 = vpack.c.bf16 %v229_v20, %v228_v19  ;;  %v1771_v24 = vld [vmem:[%s2455_s1] sm:$0xff]   ;;  %v230_v25 = vld [vmem:[%s2014_s9 + $0x30] sm:$0xff] }
  0x37   : > { %1551 = vmatprep.subr.bf16.mxu0 %v1766_v10  ;;  %v231_v26 = vld [vmem:[%s2014_s9 + $0x38] sm:$0xff]  ;;  %v232_v27 = vld [vmem:[%s2014_s9 + $0x40] sm:$0xff]  ;;  %v233_v28 = vld [vmem:[%s2014_s9 + $0x48] sm:$0xff] }
  0x38   : > { %v243_v29 = vpack.c.bf16 %v231_v26, %v230_v25  ;;  %v1772_v30 = vld [vmem:[%s2457_s3 + $0x38] sm:$0xff]   ;;  %v244_v31 = vpack.c.bf16 %v233_v28, %v232_v27  ;;  %v1773_v32 = vld [vmem:[%s2457_s3 + $0x30] sm:$0xff]   ;;  %v236_v35 = vld [vmem:[%s2014_s9 + $0x60] sm:$0xff] }
  0x39   : > { %1584 = vmatpush3.bf16.msra.mxu1 %v1758_v2  ;;  %v234_v33 = vld [vmem:[%s2014_s9 + $0x50] sm:$0xff]  ;;  %v235_v34 = vld [vmem:[%s2014_s9 + $0x58] sm:$0xff]  ;;  %v237_v36 = vld [vmem:[%s2014_s9 + $0x68] sm:$0xff] }
  0x3a   : > { %1585 = vmatprep.subr.bf16.mxu1 %v1759_v3  ;;  %1552 = vmatpush3.bf16.msra.mxu0 %v1766_v10  ;;  %v245_v37 = vpack.c.bf16 %v235_v34, %v234_v33  ;;  %v1774_v38 = vld [vmem:[%s2457_s3 + $0x28] sm:$0xff]   ;;  %v246_v39 = vpack.c.bf16 %v237_v36, %v236_v35  ;;  %v1775_v40 = vld [vmem:[%s2457_s3 + $0x20] sm:$0xff]   ;;  %v238_v41 = vld [vmem:[%s2014_s9 + $0x70] sm:$0xff] }
  0x3b   : > { %1553 = vmatprep.subr.bf16.mxu0 %v1767_v12  ;;  %v239_v42 = vld [vmem:[%s2014_s9 + $0x78] sm:$0xff]  ;;  %v1777_v45 = vld [vmem:[%s2457_s3 + $0x10] sm:$0xff]   ;;  %v1778_v46 = vld [vmem:[%s2457_s3 + $0x8] sm:$0xff]  }
  0x3c   : > { %v247_v43 = vpack.c.bf16 %v239_v42, %v238_v41  ;;  %v1776_v44 = vld [vmem:[%s2457_s3 + $0x18] sm:$0xff]   ;;  %v1779_v47 = vld [vmem:[%s2457_s3] sm:$0xff]  }
  0x3d   : > { %1586 = vmatpush3.bf16.msra.mxu1 %v1759_v3 }
  0x3e   : > { %1587 = vmatprep.subr.bf16.mxu1 %v1760_v9  ;;  %1554 = vmatpush3.bf16.msra.mxu0 %v1767_v12 }
  0x3f   : > { %1555 = vmatprep.subr.bf16.mxu0 %v1768_v14 }
  0x41   : > { %1588 = vmatpush3.bf16.msra.mxu1 %v1760_v9 }
  0x42   : > { %1589 = vmatprep.subr.bf16.mxu1 %v1761_v11  ;;  %1556 = vmatpush3.bf16.msra.mxu0 %v1768_v14 }
  0x43   : > { %1557 = vmatprep.subr.bf16.mxu0 %v1769_v18 }
  0x45   : > { %1590 = vmatpush3.bf16.msra.mxu1 %v1761_v11 }
  0x46   : > { %1591 = vmatprep.subr.bf16.mxu1 %v1762_v13  ;;  %1558 = vmatpush3.bf16.msra.mxu0 %v1769_v18 }
  0x47   : > { %1559 = vmatprep.subr.bf16.mxu0 %v1770_v22 }
  0x49   : > { %1592 = vmatpush3.bf16.msra.mxu1 %v1762_v13 }
  0x4a   : > { %1593 = vmatprep.subr.bf16.mxu1 %v1763_v15  ;;  %1560 = vmatpush3.bf16.msra.mxu0 %v1770_v22 }
  0x4b   : > { %1561 = vmatprep.subr.bf16.mxu0 %v1771_v24 }
  0x4d   : > { %1594 = vmatpush3.bf16.msra.mxu1 %v1763_v15 }
  0x4e   : > { %1562 = vmatpush3.bf16.msra.mxu0 %v1771_v24 }
  0x4f   : > { %1611 = vmatprep.subr.bf16.mxu0 %v1772_v30 }
  0x50   : > { %1596 = vmatmul.mubr.bf16.vlgmr.msra.gmra.mxu1 %v2072_v21 }
  0x51   : > { %1599 = vmatprep.mubr.bf16.mxu1 %v242_v23  ;;  %1564 = vmatmul.mubr.bf16.vlgmr.msra.gmra.mxu0 %v2072_v21 }
  0x52   : > { %1567 = vmatprep.mubr.bf16.mxu0 %v242_v23  ;;  %1612 = vmatpush3.bf16.msra.mxu0 %v1772_v30 }
  0x53   : > { %1613 = vmatprep.subr.bf16.mxu0 %v1773_v32 }
  0x56   : > { %1614 = vmatpush3.bf16.msra.mxu0 %v1773_v32 }
  0x57   : > { %1615 = vmatprep.subr.bf16.mxu0 %v1774_v38 }
  0x58   : > { %1600 = vmatmul.mubr.bf16.gmra.mxu1 %v243_v29 }
  0x59   : > { %1603 = vmatprep.mubr.bf16.mxu1 %v244_v31  ;;  %1568 = vmatmul.mubr.bf16.gmra.mxu0 %v243_v29 }
  0x5a   : > { %1571 = vmatprep.mubr.bf16.mxu0 %v244_v31  ;;  %1616 = vmatpush3.bf16.msra.mxu0 %v1774_v38 }
  0x5b   : > { %1617 = vmatprep.subr.bf16.mxu0 %v1775_v40 }
  0x5e   : > { %1618 = vmatpush3.bf16.msra.mxu0 %v1775_v40 }
  0x5f   : > { %1619 = vmatprep.subr.bf16.mxu0 %v1776_v44 }
  0x60   : > { %1604 = vmatmul.mubr.bf16.gmra.mxu1 %v245_v37 }
  0x61   : > { %1607 = vmatprep.mubr.bf16.mxu1 %v246_v39  ;;  %1572 = vmatmul.mubr.bf16.gmra.mxu0 %v245_v37 }
  0x62   : > { %1575 = vmatprep.mubr.bf16.mxu0 %v246_v39  ;;  %1620 = vmatpush3.bf16.msra.mxu0 %v1776_v44 }
  0x63   : > { %1621 = vmatprep.subr.bf16.mxu0 %v1777_v45 }
  0x66   : > { %1622 = vmatpush3.bf16.msra.mxu0 %v1777_v45 }
  0x67   : > { %1623 = vmatprep.subr.bf16.mxu0 %v1778_v46 }
  0x68   : > { %1608 = vmatmul.mubr.bf16.gmra.mxu1 %v247_v43 }
  0x69   : > { %1576 = vmatmul.mubr.bf16.gmra.mxu0 %v247_v43 }
  0x6a   : > { %1624 = vmatpush3.bf16.msra.mxu0 %v1778_v46  ;;  %1627 = vmatprep.mubr.bf16.mxu0 %v2034_v6 }
  0x6b   : > { %1625 = vmatprep.subr.bf16.mxu0 %v1779_v47 }
  0x6e   : > { %1626 = vmatpush3.bf16.msra.mxu0 %v1779_v47 }
  0x71   : > { %1628 = vmatmul.mubr.bf16.vlgmr.msra.gmra.mxu0 %v2072_v21 }
  0x72   : > { %1631 = vmatprep.mubr.bf16.mxu0 %v242_v23 }
  0x79   : > { %1632 = vmatmul.mubr.bf16.gmra.mxu0 %v243_v29 }
  0x7a   : > { %1635 = vmatprep.mubr.bf16.mxu0 %v244_v31 }
  0x81   : > { %1636 = vmatmul.mubr.bf16.gmra.mxu0 %v245_v37 }
  0x82   : > { %1639 = vmatprep.mubr.bf16.mxu0 %v246_v39 }
  0x89   : > { %1640 = vmatmul.mubr.bf16.gmra.mxu0 %v247_v43 }
 0x110   : > { %v1597_v48 = vpop.f32.mrf.mxu1 }
 0x111   : > { %v1565_v54 = vpop.f32.mrf.mxu0 }
 0x112   : > { %v507_v49 = vpop.f32.mrf.mxu1 }
 0x113   : > { %v346_v56 = vpop.f32.mrf.mxu0 }
 0x114   : > { %v1598_v50 = vpop.f32.mrf.mxu1 }
 0x115   : > { %v1566_v59 = vpop.f32.mrf.mxu0  ;;  %v740_v7 = vpack.c.bf16 %v1598_v50, %v1597_v48 }
 0x116   : > { %v510_v51 = vpop.f32.mrf.mxu1  ;;  %v732_v28 = vpack.c.bf16 %v1566_v59, %v1565_v54 }
 0x117   : > { %v349_v63 = vpop.f32.mrf.mxu0  ;;  %v764_v18 = vsel %vm747_vm0, %v740_v7, 0  ;;  %v739_v19 = vpack.c.bf16 %v510_v51, %v507_v49 }
 0x118   : > { %v1601_v52 = vpop.f32.mrf.mxu1  ;;  %v731_v0 = vpack.c.bf16 %v349_v63, %v346_v56 }
 0x119   : > { %v1569_v2 = vpop.f32.mrf.mxu0  ;;  %v761_v24 = vsel %vm747_vm0, %v739_v19, 0 }
 0x11a   : > { %v523_v53 = vpop.f32.mrf.mxu1  ;;  %1651 = vmatprep.mubr.msk.bf16.mxu1 %vm747_vm0, %v731_v0 }
 0x11b   : > { %v362_v4 = vpop.f32.mrf.mxu0 }
 0x11c   : > { %v1602_v55 = vpop.f32.mrf.mxu1 }
 0x11d   : > { %v742_v57 = vpack.c.bf16 %v1602_v55, %v1601_v52  ;;  %v1570_v6 = vpop.f32.mrf.mxu0 }
 0x11e   : > { %v526_v58 = vpop.f32.mrf.mxu1  ;;  %v734_v33 = vpack.c.bf16 %v1570_v6, %v1569_v2 }
 0x11f   : > { %v770_v60 = vsel %vm747_vm0, %v742_v57, 0  ;;  %v741_v61 = vpack.c.bf16 %v526_v58, %v523_v53  ;;  %1707 = vmatprep.subr.msk.bf16.mxu1 %vm747_vm0, %v742_v57  ;;  %v365_v10 = vpop.f32.mrf.mxu0 }
 0x120   : > { %v1605_v62 = vpop.f32.mrf.mxu1  ;;  %1644 = vmatpush3.bf16.xpose.msra.mxu1 %v770_v60  ;;  %v733_v27 = vpack.c.bf16 %v365_v10, %v362_v4 }
 0x121   : > { %1708 = vmatprep.subr.msk.bf16.mxu1 %vm747_vm0, %v741_v61  ;;  %v767_v8 = vsel %vm747_vm0, %v741_v61, 0  ;;  %v1573_v12 = vpop.f32.mrf.mxu0 }
 0x122   : > { %v539_v1 = vpop.f32.mrf.mxu1 }
 0x123   : > { %v378_v14 = vpop.f32.mrf.mxu0 }
 0x124   : > { %v1606_v3 = vpop.f32.mrf.mxu1 }
 0x125   : > { %v1574_v17 = vpop.f32.mrf.mxu0  ;;  %v744_v25 = vpack.c.bf16 %v1606_v3, %v1605_v62  ;;  %v942_v62 = vlaneseq }
 0x126   : > { %v542_v5 = vpop.f32.mrf.mxu1  ;;  %v736_v38 = vpack.c.bf16 %v1574_v17, %v1573_v12 }
 0x127   : > { %v381_v22 = vpop.f32.mrf.mxu0  ;;  %v853_v30 = vsel %vm747_vm0, %v744_v25, 0  ;;  %v743_v31 = vpack.c.bf16 %v542_v5, %v539_v1  ;;  %v2151_v63 = vshrl.u32 %v942_v62, 7  ;;  %v2156_v1 = vand.u32 127, %v942_v62 }
 0x128   : > { %v1609_v9 = vpop.f32.mrf.mxu1  ;;  %1646 = vmatpush3.bf16.xpose.msra.mxu1 %v767_v8  ;;  %v735_v23 = vpack.c.bf16 %v381_v22, %v378_v14 }
 0x129   : > { %1709 = vmatprep.subr.msk.bf16.mxu1 %vm747_vm0, %v740_v7  ;;  %v1577_v29 = vpop.f32.mrf.mxu0  ;;  %v850_v35 = vsel %vm747_vm0, %v743_v31, 0  ;;  %v2154_v0 = vadd.s32 16, %v2151_v63  ;;  %v2161_v3 = vadd.s32 24, %v2151_v63  ;;  %vm953_vm3 = vcmp.ge.s32.totalorder %v2151_v63, %v2156_v1 }
 0x12a   : > { %v555_v11 = vpop.f32.mrf.mxu1  ;;  %1667 = vmatprep.mubr.msk.bf16.mxu0 %vm747_vm0, %v735_v23  ;;  %v2166_v6 = vadd.s32 8, %v2151_v63 }
 0x12b   : > { %v394_v32 = vpop.f32.mrf.mxu0  ;;  %vm955_vm1 = vcmp.ge.s32.totalorder %v2154_v0, %v2156_v1  ;;  %vm956_vm4 = vcmp.ge.s32.totalorder %v2161_v3, %v2156_v1 }
 0x12c   : > { %v1610_v13 = vpop.f32.mrf.mxu1  ;;  %vm954_vm5 = vcmp.ge.s32.totalorder %v2166_v6, %v2156_v1 }
 0x12d   : > { %v746_v15 = vpack.c.bf16 %v1610_v13, %v1609_v9  ;;  %v1578_v34 = vpop.f32.mrf.mxu0 }
 0x12e   : > { %v558_v16 = vpop.f32.mrf.mxu1  ;;  %v738_v39 = vpack.c.bf16 %v1578_v34, %v1577_v29 }
 0x12f   : > { %v859_v20 = vsel %vm747_vm0, %v746_v15, 0  ;;  %v745_v21 = vpack.c.bf16 %v558_v16, %v555_v11  ;;  %1711 = vmatprep.subr.msk.bf16.mxu0 %vm747_vm0, %v746_v15  ;;  %v397_v36 = vpop.f32.mrf.mxu0  ;;  %v947_v15 = vadd.s32 32, %v2151_v63 }
 0x130   : > { %1648 = vmatpush3.bf16.xpose.msra.mxu1 %v764_v18  ;;  %1660 = vmatpush3.bf16.xpose.msra.mxu0 %v859_v20  ;;  %v737_v37 = vpack.c.bf16 %v397_v36, %v394_v32  ;;  %v2195_v20 = vadd.s32 48, %v2151_v63 }
 0x131   : > { %1710 = vmatprep.subr.msk.bf16.mxu1 %vm747_vm0, %v739_v19  ;;  %1712 = vmatprep.subr.msk.bf16.mxu0 %vm747_vm0, %v745_v21  ;;  %v856_v26 = vsel %vm747_vm0, %v745_v21, 0  ;;  %v1629_v40 = vpop.f32.mrf.mxu0  ;;  %vm957_vm6 = vcmp.ge.s32.totalorder %v947_v15, %v2156_v1 }
 0x132   : > { %vm959_vm7 = vcmp.ge.s32.totalorder %v2195_v20, %v2156_v1 }
 0x133   : > { %v668_v41 = vpop.f32.mrf.mxu0 }
 0x135   : > { %v1630_v42 = vpop.f32.mrf.mxu0 }
 0x136   : > { %v1163_v51 = vpack.c.bf16 %v1630_v42, %v1629_v40 }
 0x137   : > { %v671_v43 = vpop.f32.mrf.mxu0 }
 0x138   : > { %1650 = vmatpush3.bf16.xpose.msra.mxu1 %v761_v24  ;;  %1662 = vmatpush3.bf16.xpose.msra.mxu0 %v856_v26  ;;  %v1162_v54 = vpack.c.bf16 %v671_v43, %v668_v41  ;;  %v948_v24 = vadd.s32 40, %v2151_v63 }
 0x139   : > { %1713 = vmatprep.subr.msk.bf16.mxu0 %vm747_vm0, %v744_v25  ;;  %v1633_v44 = vpop.f32.mrf.mxu0 }
 0x13a   : > { %vm958_vm8 = vcmp.ge.s32.totalorder %v948_v24, %v2156_v1 }
 0x13b   : > { %v684_v45 = vpop.f32.mrf.mxu0 }
 0x13d   : > { %v1634_v46 = vpop.f32.mrf.mxu0 }
 0x13e   : > { %v1165_v47 = vpack.c.bf16 %v1634_v46, %v1633_v44 }
 0x13f   : > { %1652 = vmatmul.mubr.msk.bf16.vlgmr.msra.gmra.mxu1 %vm747_vm0, %v732_v28  ;;  %v687_v48 = vpop.f32.mrf.mxu0  ;;  %v950_v28 = vadd.s32 56, %v2151_v63 }
 0x140   : > { %1664 = vmatpush3.bf16.xpose.msra.mxu0 %v853_v30  ;;  %1655 = vmatprep.mubr.msk.bf16.mxu1 %vm747_vm0, %v733_v27  ;;  %v1164_v49 = vpack.c.bf16 %v687_v48, %v684_v45 }
 0x141   : > { %1714 = vmatprep.subr.msk.bf16.mxu0 %vm747_vm0, %v743_v31  ;;  %1675 = vmatprep.subr.bf16.mxu1 %v1165_v47  ;;  %v1637_v50 = vpop.f32.mrf.mxu0  ;;  %vm960_vm9 = vcmp.ge.s32.totalorder %v950_v28, %v2156_v1 }
 0x142   : > { %1676 = vmatpush3.bf16.msra.mxu1 %v1165_v47 }
 0x143   : > { %1677 = vmatprep.subr.bf16.mxu1 %v1164_v49  ;;  %v700_v52 = vpop.f32.mrf.mxu0 }
 0x145   : > { %v1638_v53 = vpop.f32.mrf.mxu0 }
 0x146   : > { %1678 = vmatpush3.bf16.msra.mxu1 %v1164_v49  ;;  %v2142_v55 = vpack.c.bf16 %v1638_v53, %v1637_v50 }
 0x147   : > { %1656 = vmatmul.mubr.msk.bf16.gmra.mxu1 %vm747_vm0, %v734_v33  ;;  %1679 = vmatprep.subr.bf16.mxu1 %v1163_v51  ;;  %v703_v56 = vpop.f32.mrf.mxu0 }
 0x148   : > { %1666 = vmatpush3.bf16.xpose.msra.mxu0 %v850_v35  ;;  %v2144_v57 = vpack.c.bf16 %v703_v56, %v700_v52 }
 0x149   : > { %v1641_v58 = vpop.f32.mrf.mxu0 }
 0x14a   : > { %1680 = vmatpush3.bf16.msra.mxu1 %v1163_v51 }
 0x14b   : > { %1681 = vmatprep.subr.bf16.mxu1 %v1162_v54  ;;  %v2146_v59 = vpop.f32.mrf.mxu0 }
 0x14d   : > { %v1642_v60 = vpop.f32.mrf.mxu0 }
 0x14e   : > { %1682 = vmatpush3.bf16.msra.mxu1 %v1162_v54  ;;  %v2148_v61 = vpack.c.bf16 %v1642_v60, %v1641_v58 }
 0x14f   : > { %1668 = vmatmul.mubr.msk.bf16.vlgmr.msra.gmra.mxu0 %vm747_vm0, %v736_v38  ;;  %v2213_v30 = vpop.f32.mrf.mxu0 }
 0x150   : > { %1671 = vmatprep.mubr.msk.bf16.mxu0 %vm747_vm0, %v737_v37  ;;  %1691 = vmatprep.subr.bf16.mxu1 %v2148_v61 }
 0x157   : > { %1672 = vmatmul.mubr.msk.bf16.gmra.mxu0 %vm747_vm0, %v738_v39 }
 0x1ff   : > { %v1653_v2 = vpop.f32.mrf.mxu1 }
 0x200   : > { %v928_v4 = vmul.f32 0.088388346, %v1653_v2 }
 0x201   : > { %v806_v5 = vpop.f32.mrf.mxu1 }
 0x202   : > { %v926_v7 = vmul.f32 0.088388346, %v806_v5  ;;  %v2171_v8 = vsel %vm955_vm1, %v928_v4, -1e+30 }
 0x203   : > { %v1654_v9 = vpop.f32.mrf.mxu1  ;;  %v984_v10 = vsel %vm977_vm2, %v2171_v8, -inf }
 0x204   : > { %v929_v11 = vmul.f32 0.088388346, %v1654_v9  ;;  %985 = vmax.xlane.f32.xlu1 %v984_v10  ;;  %v2180_v12 = vsel %vm953_vm3, %v926_v7, -1e+30 }
 0x205   : > { %v809_v13 = vpop.f32.mrf.mxu1  ;;  %v978_v14 = vsel %vm977_vm2, %v2180_v12, -inf }
 0x206   : > { %v927_v16 = vmul.f32 0.088388346, %v809_v13  ;;  %979 = vmax.xlane.f32.xlu0 %v978_v14  ;;  %v2190_v17 = vsel %vm956_vm4, %v929_v11, -1e+30 }
 0x207   : > { %v1657_v18 = vpop.f32.mrf.mxu1  ;;  %v987_v19 = vsel %vm977_vm2, %v2190_v17, -inf }
 0x208   : > { %988 = vmax.xlane.f32.xlu1 %v987_v19  ;;  %v2200_v21 = vsel %vm954_vm5, %v927_v16, -1e+30  ;;  %v932_v25 = vmul.f32 0.088388346, %v1657_v18 }
 0x209   : > { %v822_v22 = vpop.f32.mrf.mxu1  ;;  %v981_v23 = vsel %vm977_vm2, %v2200_v21, -inf }
 0x20a   : > { %v930_v26 = vmul.f32 0.088388346, %v822_v22  ;;  %982 = vmax.xlane.f32.xlu0 %v981_v23  ;;  %v2221_v35 = vsel %vm959_vm7, %v932_v25, -1e+30 }
 0x20b   : > { %v1658_v27 = vpop.f32.mrf.mxu1  ;;  %v996_v39 = vsel %vm977_vm2, %v2221_v35, -inf }
 0x20c   : > { %v2211_v29 = vsel %vm957_vm6, %v930_v26, -1e+30  ;;  %v933_v33 = vmul.f32 0.088388346, %v1658_v27 }
 0x20d   : > { %v825_v31 = vpop.f32.mrf.mxu1  ;;  %v990_v32 = vsel %vm977_vm2, %v2211_v29, -inf }
 0x20e   : > { %v931_v34 = vmul.f32 0.088388346, %v825_v31  ;;  %991 = vmax.xlane.f32.xlu0 %v990_v32  ;;  %v2234_v43 = vsel %vm960_vm9, %v933_v33, -1e+30 }
 0x20f   : > { %v1669_v36 = vpop.f32.mrf.mxu0  ;;  %v999_v47 = vsel %vm977_vm2, %v2234_v43, -inf }
 0x210   : > { %v2226_v37 = vsel %vm958_vm8, %v931_v34, -1e+30  ;;  %v936_v41 = vmul.f32 0.088388346, %v1669_v36 }
 0x211   : > { %v895_v38 = vpop.f32.mrf.mxu0  ;;  %v993_v40 = vsel %vm977_vm2, %v2226_v37, -inf }
 0x212   : > { %v934_v42 = vmul.f32 0.088388346, %v895_v38  ;;  %997 = vmax.xlane.f32.xlu0 %v996_v39  ;;  %994 = vmax.xlane.f32.xlu1 %v993_v40  ;;  %v2248_v51 = vsel %vm955_vm1, %v936_v41, -1e+30 }
 0x213   : > { %v1670_v44 = vpop.f32.mrf.mxu0  ;;  %v1008_v56 = vsel %vm977_vm2, %v2248_v51, -inf }
 0x214   : > { %v2239_v45 = vsel %vm953_vm3, %v934_v42, -1e+30  ;;  %v937_v49 = vmul.f32 0.088388346, %v1670_v44 }
 0x215   : > { %v898_v46 = vpop.f32.mrf.mxu0  ;;  %v1002_v48 = vsel %vm977_vm2, %v2239_v45, -inf }
 0x216   : > { %v935_v50 = vmul.f32 0.088388346, %v898_v46  ;;  %1000 = vmax.xlane.f32.xlu1 %v999_v47  ;;  %1003 = vmax.xlane.f32.xlu0 %v1002_v48  ;;  %v2262_v63 = vsel %vm956_vm4, %v937_v49, -1e+30 }
 0x217   : > { %v1673_v52 = vpop.f32.mrf.mxu0  ;;  %v1011_v5 = vsel %vm977_vm2, %v2262_v63, -inf }
 0x218   : > { %v2253_v53 = vsel %vm954_vm5, %v935_v50, -1e+30  ;;  %v940_v60 = vmul.f32 0.088388346, %v1673_v52 }
 0x219   : > { %v911_v54 = vpop.f32.mrf.mxu0  ;;  %v1005_v58 = vsel %vm977_vm2, %v2253_v53, -inf }
 0x21a   : > { %v938_v62 = vmul.f32 0.088388346, %v911_v54  ;;  %1009 = vmax.xlane.f32.xlu0 %v1008_v56  ;;  %1006 = vmax.xlane.f32.xlu1 %v1005_v58  ;;  %v2275_v3 = vsel %vm959_vm7, %v940_v60, -1e+30 }
 0x21b   : > { %v1674_v0 = vpop.f32.mrf.mxu0  ;;  %v1020_v11 = vsel %vm977_vm2, %v2275_v3, -inf }
 0x21c   : > { %v2266_v2 = vsel %vm957_vm6, %v938_v62, -1e+30  ;;  %v941_v7 = vmul.f32 0.088388346, %v1674_v0 }
 0x21d   : > { %v914_v4 = vpop.f32.mrf.mxu0  ;;  %v1014_v6 = vsel %vm977_vm2, %v2266_v2, -inf }
 0x21e   : > { %v939_v9 = vmul.f32 0.088388346, %v914_v4  ;;  %1012 = vmax.xlane.f32.xlu1 %v1011_v5  ;;  %1015 = vmax.xlane.f32.xlu0 %v1014_v6  ;;  %v2287_v14 = vsel %vm960_vm9, %v941_v7, -1e+30 }
 0x21f   : > { %v1023_v15 = vsel %vm977_vm2, %v2287_v14, -inf }
 0x220   : > { %v2279_v10 = vsel %vm958_vm8, %v939_v9, -1e+30 }
 0x221   : > { %v1017_v13 = vsel %vm977_vm2, %v2279_v10, -inf }
 0x222   : > { %1021 = vmax.xlane.f32.xlu0 %v1020_v11  ;;  %1018 = vmax.xlane.f32.xlu1 %v1017_v13 }
 0x226   : > { %1024 = vmax.xlane.f32.xlu1 %v1023_v15 }
 0x28d   : > { %v986_v16 = vpop.xlane.xlu1 %985 }
 0x28e   : > { %v1028_v18 = vsub.f32 %v2171_v8, %v986_v16 }
 0x28f   : > { %v980_v19 = vpop.xlane.xlu0 %979 }
 0x290   : > { %v1026_v20 = vsub.f32 %v2180_v12, %v980_v19  ;;  %v1046_v23 = vmul.f32 1.442695, %v1028_v18 }
 0x291   : > { %v989_v22 = vpop.xlane.xlu1 %988 }
 0x292   : > { %v1042_v24 = vmul.f32 1.442695, %v1026_v20  ;;  %v1029_v25 = vsub.f32 %v2190_v17, %v989_v22 }
 0x293   : > { %v983_v26 = vpop.xlane.xlu0 %982 }
 0x294   : > { %1780 = vpow2.f32 %v1042_v24  ;;  %v1027_v1 = vsub.f32 %v2200_v21, %v983_v26  ;;  %v1048_v27 = vmul.f32 1.442695, %v1029_v25 }
 0x295   : > { %1782 = vpow2.f32 %v1046_v23 }
 0x296   : > { %v1044_v28 = vmul.f32 1.442695, %v1027_v1 }
 0x297   : > { %v992_v31 = vpop.xlane.xlu0 %991 }
 0x298   : > { %1784 = vpow2.f32 %v1044_v28  ;;  %v1030_v32 = vsub.f32 %v2211_v29, %v992_v31 }
 0x299   : > { %1786 = vpow2.f32 %v1048_v27 }
 0x29a   : > { %v1050_v8 = vmul.f32 1.442695, %v1030_v32 }
 0x29b   : > { %v998_v33 = vpop.xlane.xlu0 %997  ;;  %v995_v12 = vpop.xlane.xlu1 %994 }
 0x29c   : > { %1788 = vpow2.f32 %v1050_v8  ;;  %v1032_v34 = vsub.f32 %v2221_v35, %v998_v33  ;;  %v1031_v17 = vsub.f32 %v2226_v37, %v995_v12 }
 0x29e   : > { %v1054_v36 = vmul.f32 1.442695, %v1032_v34  ;;  %v1052_v38 = vmul.f32 1.442695, %v1031_v17 }
 0x29f   : > { %v1001_v39 = vpop.xlane.xlu1 %1000  ;;  %v1004_v21 = vpop.xlane.xlu0 %1003 }
 0x2a0   : > { %1790 = vpow2.f32 %v1054_v36  ;;  %v1033_v40 = vsub.f32 %v2234_v43, %v1001_v39  ;;  %v1034_v41 = vsub.f32 %v2239_v45, %v1004_v21 }
 0x2a1   : > { %v2300_v42 = vpop.eup %1780  ;;  %1792 = vpow2.f32 %v1052_v38 }
 0x2a2   : > { %v1056_v29 = vmul.f32 1.442695, %v1033_v40  ;;  %v1058_v44 = vmul.f32 1.442695, %v1034_v41  ;;  %v1074_v46 = vsel %vm977_vm2, %v2300_v42, 0.0  ;;  %v2304_v35 = vpop.eup %1782 }
 0x2a3   : > { %v1010_v37 = vpop.xlane.xlu0 %1009  ;;  %v1007_v47 = vpop.xlane.xlu1 %1006  ;;  %1075 = vadd.xlane.f32.xlu0 %v1074_v46  ;;  %v1080_v52 = vsel %vm977_vm2, %v2304_v35, 0.0 }
 0x2a4   : > { %1794 = vpow2.f32 %v1056_v29  ;;  %v1036_v48 = vsub.f32 %v2248_v51, %v1010_v37  ;;  %v1035_v43 = vsub.f32 %v2253_v53, %v1007_v47 }
 0x2a5   : > { %v2308_v49 = vpop.eup %1784  ;;  %1796 = vpow2.f32 %v1058_v44 }
 0x2a6   : > { %v1062_v45 = vmul.f32 1.442695, %v1036_v48  ;;  %v1060_v50 = vmul.f32 1.442695, %v1035_v43  ;;  %v1077_v54 = vsel %vm977_vm2, %v2308_v49, 0.0  ;;  %v2314_v56 = vpop.eup %1786 }
 0x2a7   : > { %v1013_v58 = vpop.xlane.xlu1 %1012  ;;  %1081 = vadd.xlane.f32.xlu0 %v1080_v52  ;;  %v1016_v60 = vpop.xlane.xlu0 %1015  ;;  %1078 = vadd.xlane.f32.xlu1 %v1077_v54  ;;  %v1083_v6 = vsel %vm977_vm2, %v2314_v56, 0.0 }
 0x2a8   : > { %1798 = vpow2.f32 %v1062_v45  ;;  %v1037_v51 = vsub.f32 %v2262_v63, %v1013_v58  ;;  %v1038_v53 = vsub.f32 %v2266_v2, %v1016_v60 }
 0x2a9   : > { %v2318_v62 = vpop.eup %1788  ;;  %1800 = vpow2.f32 %v1060_v50 }
 0x2aa   : > { %v1064_v0 = vmul.f32 1.442695, %v1037_v51  ;;  %v1066_v4 = vmul.f32 1.442695, %v1038_v53  ;;  %v1086_v5 = vsel %vm977_vm2, %v2318_v62, 0.0 }
 0x2ab   : > { %1087 = vadd.xlane.f32.xlu0 %v1086_v5  ;;  %v1022_v7 = vpop.xlane.xlu0 %1021  ;;  %1084 = vadd.xlane.f32.xlu1 %v1083_v6  ;;  %v1019_v9 = vpop.xlane.xlu1 %1018 }
 0x2ac   : > { %1802 = vpow2.f32 %v1064_v0  ;;  %v1040_v63 = vsub.f32 %v2275_v3, %v1022_v7  ;;  %v1039_v2 = vsub.f32 %v2279_v10, %v1019_v9 }
 0x2ad   : > { %v2326_v11 = vpop.eup %1790  ;;  %1804 = vpow2.f32 %v1066_v4 }
 0x2ae   : > { %v2328_v13 = vpop.eup %1792  ;;  %v1070_v15 = vmul.f32 1.442695, %v1040_v63  ;;  %v1068_v16 = vmul.f32 1.442695, %v1039_v2  ;;  %v1092_v18 = vsel %vm977_vm2, %v2326_v11, 0.0 }
 0x2af   : > { %1093 = vadd.xlane.f32.xlu0 %v1092_v18  ;;  %v1089_v19 = vsel %vm977_vm2, %v2328_v13, 0.0  ;;  %v1025_v20 = vpop.xlane.xlu1 %1024 }
 0x2b0   : > { %1806 = vpow2.f32 %v1070_v15  ;;  %1090 = vadd.xlane.f32.xlu1 %v1089_v19  ;;  %v1041_v3 = vsub.f32 %v2287_v14, %v1025_v20 }
 0x2b1   : > { %v2335_v10 = vpop.eup %1794  ;;  %1808 = vpow2.f32 %v1068_v16 }
 0x2b2   : > { %v2337_v22 = vpop.eup %1796  ;;  %v1072_v23 = vmul.f32 1.442695, %v1041_v3  ;;  %v1095_v24 = vsel %vm977_vm2, %v2335_v10, 0.0 }
 0x2b3   : > { %v1098_v25 = vsel %vm977_vm2, %v2337_v22, 0.0 }
 0x2b4   : > { %1810 = vpow2.f32 %v1072_v23  ;;  %1099 = vadd.xlane.f32.xlu0 %v1098_v25  ;;  %1096 = vadd.xlane.f32.xlu1 %v1095_v24 }
 0x2b5   : > { %v2343_v26 = vpop.eup %1798 }
 0x2b6   : > { %v2345_v1 = vpop.eup %1800  ;;  %v1104_v14 = vsel %vm977_vm2, %v2343_v26, 0.0 }
 0x2b7   : > { %v1101_v27 = vsel %vm977_vm2, %v2345_v1, 0.0 }
 0x2b8   : > { %1105 = vadd.xlane.f32.xlu0 %v1104_v14  ;;  %1102 = vadd.xlane.f32.xlu1 %v1101_v27 }
 0x2b9   : > { %v2351_v28 = vpop.eup %1802 }
 0x2ba   : > { %v2353_v31 = vpop.eup %1804  ;;  %v1107_v32 = vsel %vm977_vm2, %v2351_v28, 0.0 }
 0x2bb   : > { %v1110_v8 = vsel %vm977_vm2, %v2353_v31, 0.0 }
 0x2bc   : > { %1111 = vadd.xlane.f32.xlu0 %v1110_v8  ;;  %1108 = vadd.xlane.f32.xlu1 %v1107_v32 }
 0x2bd   : > { %v2359_v33 = vpop.eup %1806 }
 0x2be   : > { %v2361_v12 = vpop.eup %1808  ;;  %v1116_v34 = vsel %vm977_vm2, %v2359_v33, 0.0 }
 0x2bf   : > { %v1113_v17 = vsel %vm977_vm2, %v2361_v12, 0.0 }
 0x2c0   : > { %1117 = vadd.xlane.f32.xlu0 %v1116_v34  ;;  %1114 = vadd.xlane.f32.xlu1 %v1113_v17 }
 0x2c1   : > { %v2367_v36 = vpop.eup %1810 }
 0x2c2   : > { %v1119_v38 = vsel %vm977_vm2, %v2367_v36, 0.0 }
 0x2c4   : > { %1120 = vadd.xlane.f32.xlu1 %v1119_v38 }
 0x32c   : > { %v1076_v39 = vpop.xlane.xlu0 %1075 }
 0x32d   : > { %1812 = vrcp.f32 %v1076_v39 }
 0x330   : > { %v1082_v21 = vpop.xlane.xlu0 %1081  ;;  %v1079_v40 = vpop.xlane.xlu1 %1078 }
 0x331   : > { %1814 = vrcp.f32 %v1079_v40 }
 0x332   : > { %1816 = vrcp.f32 %v1082_v21 }
 0x334   : > { %v1088_v41 = vpop.xlane.xlu0 %1087  ;;  %v1085_v29 = vpop.xlane.xlu1 %1084 }
 0x335   : > { %1818 = vrcp.f32 %v1085_v29 }
 0x336   : > { %1820 = vrcp.f32 %v1088_v41 }
 0x338   : > { %v1094_v44 = vpop.xlane.xlu0 %1093 }
 0x339   : > { %v1091_v46 = vpop.xlane.xlu1 %1090 }
 0x33a   : > { %1822 = vrcp.f32 %v1091_v46  ;;  %v1813_v37 = vpop.eup %1812 }
 0x33b   : > { %1824 = vrcp.f32 %v1094_v44  ;;  %v1138_v45 = vmul.f32 %v1813_v37, %v2300_v42 }
 0x33d   : > { %v1100_v47 = vpop.xlane.xlu0 %1099  ;;  %v1097_v48 = vpop.xlane.xlu1 %1096 }
 0x33e   : > { %v1815_v43 = vpop.eup %1814  ;;  %1826 = vrcp.f32 %v1097_v48 }
 0x33f   : > { %v1139_v50 = vmul.f32 %v1815_v43, %v2308_v49  ;;  %v1817_v52 = vpop.eup %1816  ;;  %1828 = vrcp.f32 %v1100_v47  ;;  %v1168_v49 = vpack.c.bf16 %v2213_v30, %v2146_v59 }
 0x340   : > { %v1140_v53 = vmul.f32 %v1817_v52, %v2304_v35 }
 0x341   : > { %v1106_v54 = vpop.xlane.xlu0 %1105  ;;  %v1103_v58 = vpop.xlane.xlu1 %1102  ;;  %v1154_v60 = vpack.c.bf16 %v1139_v50, %v1138_v45 }
 0x342   : > { %v1819_v51 = vpop.eup %1818  ;;  %1830 = vrcp.f32 %v1103_v58 }
 0x343   : > { %v1141_v0 = vmul.f32 %v1819_v51, %v2314_v56  ;;  %1683 = vmatprep.mubr.msk.bf16.mxu1 %vm977_vm2, %v1154_v60  ;;  %v1821_v4 = vpop.eup %1820  ;;  %1832 = vrcp.f32 %v1106_v54 }
 0x344   : > { %v1142_v9 = vmul.f32 %v1821_v4, %v2318_v62 }
 0x345   : > { %v1112_v5 = vpop.xlane.xlu0 %1111  ;;  %v1109_v6 = vpop.xlane.xlu1 %1108  ;;  %v1155_v42 = vpack.c.bf16 %v1141_v0, %v1140_v53 }
 0x346   : > { %1834 = vrcp.f32 %v1109_v6 }
 0x347   : > { %v1823_v7 = vpop.eup %1822  ;;  %1684 = vmatmul.mubr.msk.bf16.vlgmr.msra.gmra.mxu1 %vm977_vm2, %v1155_v42  ;;  %1836 = vrcp.f32 %v1112_v5 }
 0x348   : > { %v1143_v35 = vmul.f32 %v1823_v7, %v2328_v13  ;;  %1692 = vmatpush3.bf16.msra.mxu1 %v2148_v61  ;;  %v1825_v2 = vpop.eup %1824 }
 0x349   : > { %v1118_v56 = vpop.xlane.xlu0 %1117  ;;  %v1115_v63 = vpop.xlane.xlu1 %1114  ;;  %1693 = vmatprep.subr.bf16.mxu1 %v1168_v49  ;;  %v1144_v30 = vmul.f32 %v1825_v2, %v2326_v11 }
 0x34a   : > { %v1156_v15 = vpack.c.bf16 %v1143_v35, %v1142_v9  ;;  %1838 = vrcp.f32 %v1115_v63 }
 0x34b   : > { %v1827_v16 = vpop.eup %1826  ;;  %1840 = vrcp.f32 %v1118_v56 }
 0x34c   : > { %1687 = vmatprep.mubr.msk.bf16.mxu1 %vm977_vm2, %v1156_v15  ;;  %1694 = vmatpush3.bf16.msra.mxu1 %v1168_v49  ;;  %v1145_v62 = vmul.f32 %v1827_v16, %v2335_v10  ;;  %v1829_v13 = vpop.eup %1828 }
 0x34d   : > { %v1121_v59 = vpop.xlane.xlu1 %1120  ;;  %1695 = vmatprep.subr.bf16.mxu1 %v2142_v55  ;;  %v1146_v19 = vmul.f32 %v1829_v13, %v2337_v22 }
 0x34e   : > { %1842 = vrcp.f32 %v1121_v59  ;;  %v1157_v61 = vpack.c.bf16 %v1145_v62, %v1144_v30 }
 0x34f   : > { %v1831_v18 = vpop.eup %1830 }
 0x350   : > { %1688 = vmatmul.mubr.msk.bf16.gmra.mxu1 %vm977_vm2, %v1157_v61  ;;  %v1147_v20 = vmul.f32 %v1831_v18, %v2345_v1  ;;  %v1833_v3 = vpop.eup %1832 }
 0x351   : > { %1696 = vmatpush3.bf16.msra.mxu1 %v2142_v55  ;;  %v1148_v10 = vmul.f32 %v1833_v3, %v2343_v26 }
 0x352   : > { %1697 = vmatprep.subr.bf16.mxu1 %v2144_v57  ;;  %v1158_v11 = vpack.c.bf16 %v1147_v20, %v1146_v19 }
 0x353   : > { %v1835_v23 = vpop.eup %1834 }
 0x354   : > { %v1149_v24 = vmul.f32 %v1835_v23, %v2351_v28  ;;  %1699 = vmatprep.mubr.msk.bf16.mxu1 %vm977_vm2, %v1158_v11  ;;  %v1837_v25 = vpop.eup %1836 }
 0x355   : > { %1698 = vmatpush3.bf16.msra.mxu1 %v2144_v57  ;;  %v1150_v55 = vmul.f32 %v1837_v25, %v2353_v31 }
 0x356   : > { %v1159_v22 = vpack.c.bf16 %v1149_v24, %v1148_v10 }
 0x357   : > { %v1839_v14 = vpop.eup %1838 }
 0x358   : > { %v1841_v1 = vpop.eup %1840  ;;  %1700 = vmatmul.mubr.msk.bf16.vlgmr.msra.gmra.mxu1 %vm977_vm2, %v1159_v22  ;;  %v1151_v27 = vmul.f32 %v1839_v14, %v2361_v12 }
 0x359   : > { %v1152_v26 = vmul.f32 %v1841_v1, %v2359_v33 }
 0x35a   : > { %v1160_v8 = vpack.c.bf16 %v1151_v27, %v1150_v55 }
 0x35b   : > { %v1843_v32 = vpop.eup %1842 }
 0x35c   : > { %v1153_v28 = vmul.f32 %v1843_v32, %v2367_v36  ;;  %1703 = vmatprep.mubr.msk.bf16.mxu1 %vm977_vm2, %v1160_v8 }
 0x35e   : > { %v1161_v34 = vpack.c.bf16 %v1153_v28, %v1152_v26 }
 0x360   : > { %1704 = vmatmul.mubr.msk.bf16.gmra.mxu1 %vm977_vm2, %v1161_v34 }
 0x407   : > { %v1685_v57 = vpop.f32.mrf.mxu1 }
 0x408   : > { %1326 = vst.msk [vmem:[%s2407_s25 + $0x10] sm:$0xff] %vm747_vm0, %v1685_v57 }
 0x409   : > { %v1216_v31 = vpop.f32.mrf.mxu1 }
 0x40a   : > { %1324 = vst.msk [vmem:[%s2407_s25] sm:$0xff] %vm747_vm0, %v1216_v31 }
 0x40b   : > { %v1686_v33 = vpop.f32.mrf.mxu1 }
 0x40c   : > { %1327 = vst.msk [vmem:[%s2407_s25 + $0x18] sm:$0xff] %vm747_vm0, %v1686_v33 }
 0x40d   : > { %v1219_v12 = vpop.f32.mrf.mxu1 }
 0x40e   : > { %1325 = vst.msk [vmem:[%s2407_s25 + $0x8] sm:$0xff] %vm747_vm0, %v1219_v12 }
 0x410   : > { %v1689_v17 = vpop.f32.mrf.mxu1 }
 0x411   : > { %1330 = vst.msk [vmem:[%s2407_s25 + $0x30] sm:$0xff] %vm747_vm0, %v1689_v17 }
 0x412   : > { %v1232_v36 = vpop.f32.mrf.mxu1 }
 0x413   : > { %1328 = vst.msk [vmem:[%s2407_s25 + $0x20] sm:$0xff] %vm747_vm0, %v1232_v36 }
 0x414   : > { %v1690_v38 = vpop.f32.mrf.mxu1 }
 0x415   : > { %1331 = vst.msk [vmem:[%s2407_s25 + $0x38] sm:$0xff] %vm747_vm0, %v1690_v38 }
 0x416   : > { %v1235_v39 = vpop.f32.mrf.mxu1 }
 0x417   : > { %1329 = vst.msk [vmem:[%s2407_s25 + $0x28] sm:$0xff] %vm747_vm0, %v1235_v39 }
 0x418   : > { %v1701_v21 = vpop.f32.mrf.mxu1 }
 0x419   : > { %1334 = vst.msk [vmem:[%s2407_s25 + $0x50] sm:$0xff] %vm747_vm0, %v1701_v21 }
 0x41a   : > { %v1293_v40 = vpop.f32.mrf.mxu1 }
 0x41b   : > { %1332 = vst.msk [vmem:[%s2407_s25 + $0x40] sm:$0xff] %vm747_vm0, %v1293_v40 }
 0x41c   : > { %v1702_v41 = vpop.f32.mrf.mxu1 }
 0x41d   : > { %1335 = vst.msk [vmem:[%s2407_s25 + $0x58] sm:$0xff] %vm747_vm0, %v1702_v41 }
 0x41e   : > { %v1296_v29 = vpop.f32.mrf.mxu1 }
 0x41f   : > { %1333 = vst.msk [vmem:[%s2407_s25 + $0x48] sm:$0xff] %vm747_vm0, %v1296_v29 }
 0x420   : > { %v1705_v44 = vpop.f32.mrf.mxu1 }
 0x421   : > { %1338 = vst.msk [vmem:[%s2407_s25 + $0x70] sm:$0xff] %vm747_vm0, %v1705_v44 }
 0x422   : > { %v1309_v46 = vpop.f32.mrf.mxu1 }
 0x423   : > { %1336 = vst.msk [vmem:[%s2407_s25 + $0x60] sm:$0xff] %vm747_vm0, %v1309_v46 }
 0x424   : > { %v1706_v37 = vpop.f32.mrf.mxu1 }
 0x425   : > { %1339 = vst.msk [vmem:[%s2407_s25 + $0x78] sm:$0xff] %vm747_vm0, %v1706_v37 }
 0x426   : > { %v1312_v47 = vpop.f32.mrf.mxu1 }
 0x427   : > { %1337 = vst.msk [vmem:[%s2407_s25 + $0x68] sm:$0xff] %vm747_vm0, %v1312_v47 }
 0x428 PF: > { %p14_p9 = scmp.ge.s32.totalorder %s1956_s20, 4   ;;  %s2464_s15 = smov %s1898_s16 }
 0x429   : > { %s2465_s16 = smov %s1902_s17  ;;  %s2466_s17 = smov %s1966_s23 }
 0x42a   : > { %s2467_s18 = smov %s1956_s20  ;;  %16 = sbr.rel (!%p14_p9) target bundleno = 3 (0x3), region = 76 }
 0x42f   :  { %1364 = vsyncpa [#allocation3], 1 }
 0x430   :  { %1366 = vsyncpa [#allocation3 + $0x1], 1 }

</bundles_post_ra>
